<compile_context>
chip_gen: v6e
topology: v6e:2x2x1
jax: 0.10.0
libtpu: 0.0.40
codegen_flags: <defaults>
</compile_context>

<pallas_src>
import functools
import math

import jax
import jax.numpy as jnp
from jax.experimental import pallas as pl
from jax.experimental.pallas import tpu as pltpu


# ----------------------------- Pallas kernel -------------------------------

def _att_sr_kernel(x_ref, wm_ref, w1_ref, b1_ref, g_ref, be_ref, w2_ref, b2_ref,
                   out_ref, *, num_feat, c_per_group, eps, hw_valid):
    Cg = c_per_group
    hw_pad = x_ref.shape[-1]
    hp = jax.lax.Precision.HIGHEST

    # --- 1x1 conv_mask (reduce over channel sublanes) + softmax over HW lanes ---
    x = x_ref[...]                                               # (Bt, C, HWp) f32
    wm = wm_ref[...]                                             # (C, 1)
    logits = jnp.sum(x * wm[None, :, :], axis=1, keepdims=True)  # (Bt, 1, HWp)
    # (conv_mask bias is a constant shift over HW -> softmax no-op, dropped.)
    if hw_pad != hw_valid:
        # Mask out the lanes added by the lane-density padding.
        lane = jax.lax.broadcasted_iota(jnp.int32, logits.shape, 2)
        logits = jnp.where(lane < hw_valid, logits, jnp.float32(-1e30))
    m = jnp.max(logits, axis=-1, keepdims=True)                  # (Bt, 1, 1)
    p = jnp.exp(logits - m)                                      # (Bt, 1, HWp)
    sp_att = p / jnp.sum(p, axis=-1, keepdims=True)              # exact divide

    # --- attention pooling: context[b, c] = sum_hw x[b, c, hw] * sp_att[b, hw] ---
    context = jnp.sum(x * sp_att, axis=-1)                       # (Bt, C)

    # --- channel_sr MLP: conv1x1 -> LayerNorm([planes]) -> ReLU -> conv1x1 ---
    # (Matmuls are a negligible FLOP fraction and hide under the DMA shadow; no
    #  MXU-tiling effort is warranted here.)
    h = jnp.dot(context, w1_ref[...], precision=hp,
                preferred_element_type=jnp.float32) + b1_ref[...]    # (Bt, P)
    mu = jnp.mean(h, axis=-1, keepdims=True)
    var = jnp.mean((h - mu) ** 2, axis=-1, keepdims=True)
    hn = (h - mu) * jax.lax.rsqrt(var + eps) * g_ref[...] + be_ref[...]
    hr = jnp.maximum(hn, 0.0)
    ch = jnp.dot(hr, w2_ref[...], precision=hp,
                 preferred_element_type=jnp.float32) + b2_ref[...]   # (Bt, C)

    # --- softmax over the num_feat channel groups (channel c = f * Cg + cc) ---
    parts = [ch[:, f * Cg:(f + 1) * Cg] for f in range(num_feat)]    # each (Bt, Cg)
    gmax = parts[0]
    for t in parts[1:]:
        gmax = jnp.maximum(gmax, t)
    exps = [jnp.exp(t - gmax) for t in parts]
    gden = exps[0]
    for e in exps[1:]:
        gden = gden + e                                          # (Bt, Cg)

    # --- apply channel attention per group, sum groups (feat_sum), spatial_mul ---
    # Re-read per-group x slices from the VMEM ref at point of use instead of
    # keeping the whole (Bt, C, HWp) tile live through the loop (lower vreg
    # pressure; the 3 vld slots/cycle easily cover the re-loads).
    # TODO(synk): if C % (8 * num_feat) != 0 these slices straddle the (8,128)
    # sublane tile; pad channel groups to 8 in the wrapper if this shows up hot.
    acc = x_ref[:, 0:Cg, :] * (exps[0] / gden)[:, :, None]       # (Bt, Cg, HWp)
    for f in range(1, num_feat):
        acc = acc + x_ref[:, f * Cg:(f + 1) * Cg, :] * (exps[f] / gden)[:, :, None]
    out_ref[...] = acc * sp_att                                  # lane-dense store


# ------------------------------ wrapper ------------------------------------

def _vmem_policy():
    """Per-generation (block-budget bytes, scoped-VMEM limit bytes or None)."""
    kind = ""
    try:
        kind = jax.devices()[0].device_kind.lower()
    except Exception:
        pass
    if "v5 lite" in kind or "v5e" in kind or "v5litepod" in kind:
        return 32 << 20, 96 << 20     # 128 MiB physical, 16 MiB default scoped limit
    if "v6" in kind or "trillium" in kind:
        return 40 << 20, 100 << 20    # 128 MiB physical, 32 MiB default scoped limit
    if "7x" in kind or "v7" in kind:
        return 20 << 20, 44 << 20     # only 64 MiB physical per TensorCore
    return 16 << 20, None             # unknown / interpret: stay under every default


def _pick_batch_tile(B, C, Cg, HW_pad, budget_bytes):
    """Largest batch tile whose double-buffered (x + out) blocks fit the budget.

    No divisor-of-B requirement: the wrapper pads B up to a multiple of bt, so
    bt never collapses to 1 just because B is prime.  bt is also capped so the
    grid has >= 2 steps, letting both v7x TensorCores share the 'parallel' axis.
    """
    bytes_per_b = (C + Cg) * HW_pad * 4 * 2        # f32, double-buffered in + out
    max_bt = max(1, budget_bytes // bytes_per_b)
    bt = min(int(max_bt), B)
    if B >= 2:
        bt = min(bt, pl.cdiv(B, 2))
    return max(1, bt)
    # TODO(synk): when even bt=1 exceeds the budget (huge C*HW on v7x's 64 MiB),
    # add an 'arbitrary' HW grid axis with a two-pass / online-softmax structure.


def att_sr_forward(x_nchw, params, *, num_feat=2):
    """x_nchw: (B, C, H, W) float32. Returns (B, C // num_feat, H, W)."""
    B, C, H, W = x_nchw.shape
    HW = H * W
    Cg = C // num_feat
    P = params["w1"].shape[0]                    # planes

    # NCHW -> (B, C, HW): a free reshape (no HBM transpose pass).
    x = x_nchw.reshape(B, C, HW).astype(jnp.float32)

    # Lane-dense output: pad HW up to a multiple of 128 so stores are unmasked vst.
    HWp = ((HW + 127) // 128) * 128
    if HWp != HW:
        x = jnp.pad(x, ((0, 0), (0, 0), (0, HWp - HW)))

    tile_budget, vmem_limit = _vmem_policy()
    bt = _pick_batch_tile(B, C, Cg, HWp, tile_budget)
    nb = pl.cdiv(B, bt)
    Bp = nb * bt
    if Bp != B:
        x = jnp.pad(x, ((0, Bp - B), (0, 0), (0, 0)))

    wm = params["wm"].reshape(C, 1)              # conv_mask weight (1,C,1,1) -> (C,1)
    w1t = params["w1"].reshape(P, C).T           # conv1 weight (P,C,1,1) -> (C, P)
    b1 = params["b1"].reshape(1, P)
    gamma = params["gamma"].reshape(1, P)
    beta = params["beta"].reshape(1, P)
    w2t = params["w2"].reshape(C, P).T           # conv2 weight (C,P,1,1) -> (P, C)
    b2 = params["b2"].reshape(1, C)

    kernel = functools.partial(_att_sr_kernel, num_feat=num_feat,
                               c_per_group=Cg, eps=1e-5, hw_valid=HW)

    # Constant-weight specs (index map never changes; pl.Buffered(1) would shave the
    # second buffer copy, but the weights are tiny next to the x/out blocks).
    const = lambda shape: pl.BlockSpec(shape, lambda b: tuple(0 for _ in shape))

    cp_kwargs = dict(dimension_semantics=("parallel",))
    if vmem_limit is not None:
        cp_kwargs["vmem_limit_bytes"] = int(vmem_limit)

    out = pl.pallas_call(
        kernel,
        out_shape=jax.ShapeDtypeStruct((Bp, Cg, HWp), jnp.float32),
        grid_spec=pl.GridSpec(
            grid=(nb,),
            in_specs=[
                pl.BlockSpec((bt, C, HWp), lambda b: (b, 0, 0)),       # x
                const((C, 1)),                                         # wm
                const((C, P)),                                         # w1t
                const((1, P)),                                         # b1
                const((1, P)),                                         # gamma
                const((1, P)),                                         # beta
                const((P, C)),                                         # w2t
                const((1, C)),                                         # b2
            ],
            out_specs=pl.BlockSpec((bt, Cg, HWp), lambda b: (b, 0, 0)),
        ),
        compiler_params=pltpu.CompilerParams(**cp_kwargs),
    )(x, wm, w1t, b1, gamma, beta, w2t, b2)

    out = out[:B, :, :HW]                        # drop batch / lane padding
    return out.reshape(B, Cg, H, W)              # free reshape, no transpose


# -------------------------- pure-JAX reference ------------------------------

def att_sr_reference(x, params, *, num_feat=2):
    B, C, H, W = x.shape
    P = params["w1"].shape[0]
    HW = H * W
    hp = jax.lax.Precision.HIGHEST
    # spatial_pool (pool='att')
    logits = jnp.einsum("bchw,c->bhw", x, params["wm"].reshape(C),
                        precision=hp) + params["bm"].reshape(())
    mask = jax.nn.softmax(logits.reshape(B, HW), axis=-1)            # (B, HW)
    sp_att = mask.reshape(B, 1, H, W)
    context = jnp.einsum("bcs,bs->bc", x.reshape(B, C, HW), mask, precision=hp)
    # channel_sr_conv
    h = jnp.dot(context, params["w1"].reshape(P, C).T, precision=hp) + params["b1"]
    mu = h.mean(-1, keepdims=True)
    var = ((h - mu) ** 2).mean(-1, keepdims=True)
    h = (h - mu) / jnp.sqrt(var + 1e-5) * params["gamma"].reshape(P) + params["beta"].reshape(P)
    h = jnp.maximum(h, 0.0)
    ch = jnp.dot(h, params["w2"].reshape(C, P).T, precision=hp) + params["b2"]
    ch = jax.nn.softmax(ch.reshape(B, num_feat, C // num_feat), axis=1).reshape(B, C, 1, 1)
    out = x * ch
    out = out * sp_att
    out = out.reshape(B, num_feat, C // num_feat, H, W).sum(axis=1)
    return out


# ------------------------------ parameters ----------------------------------

def init_params(key, inplanes, planes):
    C, P = inplanes, planes
    k_mask, k_w1, k_w2 = jax.random.split(key, 3)
    # conv_mask: kaiming_uniform (fan_in = C), bias 0
    bound_mask = math.sqrt(6.0 / C)
    wm = jax.random.uniform(k_mask, (1, C, 1, 1), jnp.float32, -bound_mask, bound_mask)
    bm = jnp.zeros((1,), jnp.float32)
    # conv1 (C -> P): xavier_uniform, bias 0
    b1_bound = math.sqrt(6.0 / (C + P))
    w1 = jax.random.uniform(k_w1, (P, C, 1, 1), jnp.float32, -b1_bound, b1_bound)
    b1 = jnp.zeros((P,), jnp.float32)
    # LayerNorm([P,1,1]): default affine init
    gamma = jnp.ones((P,), jnp.float32)
    beta = jnp.zeros((P,), jnp.float32)
    # conv2 (P -> C): xavier_uniform, bias 0
    b2_bound = math.sqrt(6.0 / (P + C))
    w2 = jax.random.uniform(k_w2, (C, P, 1, 1), jnp.float32, -b2_bound, b2_bound)
    b2 = jnp.zeros((C,), jnp.float32)
    return dict(wm=wm, bm=bm, w1=w1, b1=b1, gamma=gamma, beta=beta, w2=w2, b2=b2)


# --------------------------------- main --------------------------------------

if __name__ == "__main__":
    key = jax.random.PRNGKey(0)

    # Test 1: the canonical small shape (HW already a multiple of 128).
    B, C, H, W = 2, 4, 16, 16
    PLANES, NUM_FEAT = 8, 2
    k_x, k_p, key = (*jax.random.split(key, 2), None)
    x = jax.random.normal(k_x, (B, C, H, W), jnp.float32)
    params = init_params(k_p, C, PLANES)
    out = jax.block_until_ready(att_sr_forward(x, params, num_feat=NUM_FEAT))
    ref = att_sr_reference(x, params, num_feat=NUM_FEAT)
    assert out.shape == (B, C // NUM_FEAT, H, W), out.shape
    assert jnp.allclose(out, ref, atol=1e-4, rtol=1e-4), float(jnp.abs(out - ref).max())

    # Test 2: exercises HW lane padding (7*7=49 -> 128) and batch padding (B=3 -> 4).
    B2, C2, H2, W2 = 3, 8, 7, 7
    key2 = jax.random.PRNGKey(1)
    k_x2, k_p2 = jax.random.split(key2)
    x2 = jax.random.normal(k_x2, (B2, C2, H2, W2), jnp.float32)
    params2 = init_params(k_p2, C2, PLANES)
    out2 = jax.block_until_ready(att_sr_forward(x2, params2, num_feat=NUM_FEAT))
    ref2 = att_sr_reference(x2, params2, num_feat=NUM_FEAT)
    assert out2.shape == (B2, C2 // NUM_FEAT, H2, W2), out2.shape
    assert jnp.allclose(out2, ref2, atol=1e-4, rtol=1e-4), float(jnp.abs(out2 - ref2).max())

    print("KERNEL_OK")
</pallas_src>

<mosaic_0001>
module attributes {stable_mosaic.version = 11 : i64} {
  func.func @_att_sr_kernel(%arg0: i32, %arg1: memref<1x4x256xf32, #tpu.memory_space<vmem>>, %arg2: memref<4x1xf32, #tpu.memory_space<vmem>>, %arg3: memref<4x8xf32, #tpu.memory_space<vmem>>, %arg4: memref<1x8xf32, #tpu.memory_space<vmem>>, %arg5: memref<1x8xf32, #tpu.memory_space<vmem>>, %arg6: memref<1x8xf32, #tpu.memory_space<vmem>>, %arg7: memref<8x4xf32, #tpu.memory_space<vmem>>, %arg8: memref<1x4xf32, #tpu.memory_space<vmem>>, %arg9: memref<1x2x256xf32, #tpu.memory_space<vmem>>) attributes {dimension_semantics = [#tpu.dimension_semantics<parallel>], iteration_bounds = array<i64: 2>, scalar_prefetch = 0 : i64, scratch_operands = 0 : i64, tpu.core_type = #tpu.core_type<tc>, window_params = [{transform_indices = @transform_0, window_bounds = array<i64: 1, 4, 256>}, {pipeline_mode = #tpu.pipeline_mode<synchronous>, transform_indices = @transform_1, window_bounds = array<i64: 4, 1>}, {pipeline_mode = #tpu.pipeline_mode<synchronous>, transform_indices = @transform_2, window_bounds = array<i64: 4, 8>}, {pipeline_mode = #tpu.pipeline_mode<synchronous>, transform_indices = @transform_3, window_bounds = array<i64: 1, 8>}, {pipeline_mode = #tpu.pipeline_mode<synchronous>, transform_indices = @transform_4, window_bounds = array<i64: 1, 8>}, {pipeline_mode = #tpu.pipeline_mode<synchronous>, transform_indices = @transform_5, window_bounds = array<i64: 1, 8>}, {pipeline_mode = #tpu.pipeline_mode<synchronous>, transform_indices = @transform_6, window_bounds = array<i64: 8, 4>}, {pipeline_mode = #tpu.pipeline_mode<synchronous>, transform_indices = @transform_7, window_bounds = array<i64: 1, 4>}, {transform_indices = @transform_8, window_bounds = array<i64: 1, 2, 256>}]} {
    %c0 = arith.constant 0 : index
    %c0_0 = arith.constant 0 : index
    %c0_1 = arith.constant 0 : index
    %0 = vector.load %arg1[%c0, %c0_0, %c0_1] : memref<1x4x256xf32, #tpu.memory_space<vmem>>, vector<1x4x256xf32>
    %c0_2 = arith.constant 0 : index
    %c0_3 = arith.constant 0 : index
    %1 = vector.load %arg2[%c0_2, %c0_3] : memref<4x1xf32, #tpu.memory_space<vmem>>, vector<4x1xf32>
    %2 = vector.shape_cast %1 : vector<4x1xf32> to vector<1x4x1xf32>
    %3 = vector.broadcast %2 : vector<1x4x1xf32> to vector<1x4x256xf32>
    %4 = arith.mulf %0, %3 : vector<1x4x256xf32>
    %cst = arith.constant dense<0.000000e+00> : vector<1x256xf32>
    %5 = vector.multi_reduction <add>, %4, %cst [1] : vector<1x4x256xf32> to vector<1x256xf32>
    %6 = vector.shape_cast %5 : vector<1x256xf32> to vector<1x1x256xf32>
    %cst_4 = arith.constant dense<0xFF800000> : vector<1x1xf32>
    %7 = vector.multi_reduction <maximumf>, %6, %cst_4 [2] : vector<1x1x256xf32> to vector<1x1xf32>
    %8 = vector.shape_cast %7 : vector<1x1xf32> to vector<1x1x1xf32>
    %9 = vector.broadcast %8 : vector<1x1x1xf32> to vector<1x1x256xf32>
    %10 = arith.subf %6, %9 : vector<1x1x256xf32>
    %11 = math.exp %10 : vector<1x1x256xf32>
    %cst_5 = arith.constant dense<0.000000e+00> : vector<1x1xf32>
    %12 = vector.multi_reduction <add>, %11, %cst_5 [2] : vector<1x1x256xf32> to vector<1x1xf32>
    %13 = vector.shape_cast %12 : vector<1x1xf32> to vector<1x1x1xf32>
    %14 = vector.broadcast %13 : vector<1x1x1xf32> to vector<1x1x256xf32>
    %15 = arith.divf %11, %14 : vector<1x1x256xf32>
    %16 = vector.broadcast %15 : vector<1x1x256xf32> to vector<1x4x256xf32>
    %17 = arith.mulf %0, %16 : vector<1x4x256xf32>
    %cst_6 = arith.constant dense<0.000000e+00> : vector<1x4xf32>
    %18 = vector.multi_reduction <add>, %17, %cst_6 [2] : vector<1x4x256xf32> to vector<1x4xf32>
    %c0_7 = arith.constant 0 : index
    %c0_8 = arith.constant 0 : index
    %19 = vector.load %arg3[%c0_7, %c0_8] : memref<4x8xf32, #tpu.memory_space<vmem>>, vector<4x8xf32>
    %cst_9 = arith.constant dense<0.000000e+00> : vector<1x8xf32>
    %20 = tpu.matmul %18, %19, %cst_9 {dimension_numbers = #tpu.dot_dimension_numbers<[1], [0], [0], [1], [0, 0, 1, 1], [], []>, precision = #tpu.contract_precision<fp32>} : vector<1x4xf32>, vector<4x8xf32>, vector<1x8xf32> -> vector<1x8xf32>
    %c0_10 = arith.constant 0 : index
    %c0_11 = arith.constant 0 : index
    %21 = vector.load %arg4[%c0_10, %c0_11] : memref<1x8xf32, #tpu.memory_space<vmem>>, vector<1x8xf32>
    %22 = arith.addf %20, %21 : vector<1x8xf32>
    %cst_12 = arith.constant dense<0.000000e+00> : vector<1xf32>
    %23 = vector.multi_reduction <add>, %22, %cst_12 [1] : vector<1x8xf32> to vector<1xf32>
    %24 = vector.shape_cast %23 : vector<1xf32> to vector<1x1xf32>
    %cst_13 = arith.constant 8.000000e+00 : f32
    %25 = vector.broadcast %cst_13 : f32 to vector<1x1xf32>
    %26 = arith.divf %24, %25 : vector<1x1xf32>
    %27 = vector.broadcast %26 : vector<1x1xf32> to vector<1x8xf32>
    %28 = arith.subf %22, %27 : vector<1x8xf32>
    %29 = arith.mulf %28, %28 : vector<1x8xf32>
    %cst_14 = arith.constant dense<0.000000e+00> : vector<1xf32>
    %30 = vector.multi_reduction <add>, %29, %cst_14 [1] : vector<1x8xf32> to vector<1xf32>
    %31 = vector.shape_cast %30 : vector<1xf32> to vector<1x1xf32>
    %cst_15 = arith.constant 8.000000e+00 : f32
    %32 = vector.broadcast %cst_15 : f32 to vector<1x1xf32>
    %33 = arith.divf %31, %32 : vector<1x1xf32>
    %34 = vector.broadcast %26 : vector<1x1xf32> to vector<1x8xf32>
    %35 = arith.subf %22, %34 : vector<1x8xf32>
    %cst_16 = arith.constant 9.99999974E-6 : f32
    %36 = vector.broadcast %cst_16 : f32 to vector<1x1xf32>
    %37 = arith.addf %33, %36 : vector<1x1xf32>
    %38 = math.rsqrt %37 : vector<1x1xf32>
    %39 = vector.broadcast %38 : vector<1x1xf32> to vector<1x8xf32>
    %40 = arith.mulf %35, %39 : vector<1x8xf32>
    %c0_17 = arith.constant 0 : index
    %c0_18 = arith.constant 0 : index
    %41 = vector.load %arg5[%c0_17, %c0_18] : memref<1x8xf32, #tpu.memory_space<vmem>>, vector<1x8xf32>
    %42 = arith.mulf %40, %41 : vector<1x8xf32>
    %c0_19 = arith.constant 0 : index
    %c0_20 = arith.constant 0 : index
    %43 = vector.load %arg6[%c0_19, %c0_20] : memref<1x8xf32, #tpu.memory_space<vmem>>, vector<1x8xf32>
    %44 = arith.addf %42, %43 : vector<1x8xf32>
    %cst_21 = arith.constant 0.000000e+00 : f32
    %45 = vector.broadcast %cst_21 : f32 to vector<1x8xf32>
    %46 = arith.maximumf %44, %45 : vector<1x8xf32>
    %c0_22 = arith.constant 0 : index
    %c0_23 = arith.constant 0 : index
    %47 = vector.load %arg7[%c0_22, %c0_23] : memref<8x4xf32, #tpu.memory_space<vmem>>, vector<8x4xf32>
    %cst_24 = arith.constant dense<0.000000e+00> : vector<1x4xf32>
    %48 = tpu.matmul %46, %47, %cst_24 {dimension_numbers = #tpu.dot_dimension_numbers<[1], [0], [0], [1], [0, 0, 1, 1], [], []>, precision = #tpu.contract_precision<fp32>} : vector<1x8xf32>, vector<8x4xf32>, vector<1x4xf32> -> vector<1x4xf32>
    %c0_25 = arith.constant 0 : index
    %c0_26 = arith.constant 0 : index
    %49 = vector.load %arg8[%c0_25, %c0_26] : memref<1x4xf32, #tpu.memory_space<vmem>>, vector<1x4xf32>
    %50 = arith.addf %48, %49 : vector<1x4xf32>
    %51 = vector.extract_strided_slice %50 {offsets = [0, 0], sizes = [1, 2], strides = [1, 1]} : vector<1x4xf32> to vector<1x2xf32>
    %52 = vector.extract_strided_slice %50 {offsets = [0, 2], sizes = [1, 2], strides = [1, 1]} : vector<1x4xf32> to vector<1x2xf32>
    %53 = arith.maximumf %51, %52 : vector<1x2xf32>
    %54 = arith.subf %51, %53 : vector<1x2xf32>
    %55 = math.exp %54 : vector<1x2xf32>
    %56 = arith.subf %52, %53 : vector<1x2xf32>
    %57 = math.exp %56 : vector<1x2xf32>
    %58 = arith.addf %55, %57 : vector<1x2xf32>
    %c0_27 = arith.constant 0 : index
    %c0_28 = arith.constant 0 : index
    %c0_29 = arith.constant 0 : index
    %59 = vector.load %arg1[%c0_27, %c0_28, %c0_29] : memref<1x4x256xf32, #tpu.memory_space<vmem>>, vector<1x2x256xf32>
    %60 = arith.divf %55, %58 : vector<1x2xf32>
    %61 = vector.shape_cast %60 : vector<1x2xf32> to vector<1x2x1xf32>
    %62 = vector.broadcast %61 : vector<1x2x1xf32> to vector<1x2x256xf32>
    %63 = arith.mulf %59, %62 : vector<1x2x256xf32>
    %c0_30 = arith.constant 0 : index
    %c2 = arith.constant 2 : index
    %c0_31 = arith.constant 0 : index
    %64 = vector.load %arg1[%c0_30, %c2, %c0_31] : memref<1x4x256xf32, #tpu.memory_space<vmem>>, vector<1x2x256xf32>
    %65 = arith.divf %57, %58 : vector<1x2xf32>
    %66 = vector.shape_cast %65 : vector<1x2xf32> to vector<1x2x1xf32>
    %67 = vector.broadcast %66 : vector<1x2x1xf32> to vector<1x2x256xf32>
    %68 = arith.mulf %64, %67 : vector<1x2x256xf32>
    %69 = arith.addf %63, %68 : vector<1x2x256xf32>
    %70 = vector.broadcast %15 : vector<1x1x256xf32> to vector<1x2x256xf32>
    %71 = arith.mulf %69, %70 : vector<1x2x256xf32>
    %c0_32 = arith.constant 0 : index
    %c0_33 = arith.constant 0 : index
    %c0_34 = arith.constant 0 : index
    %72 = vector.load %arg9[%c0_32, %c0_33, %c0_34] : memref<1x2x256xf32, #tpu.memory_space<vmem>>, vector<1x2x256xf32>
    tpu.vector_store %arg9[%c0_32, %c0_33, %c0_34], %71 {strides = array<i32>} : memref<1x2x256xf32, #tpu.memory_space<vmem>>, vector<1x2x256xf32>,
    return
  }
  func.func @transform_0(%arg0: i32) -> (i32, i32, i32) {
    %c0_i32 = arith.constant 0 : i32
    %c0_i32_0 = arith.constant 0 : i32
    %c0_i32_1 = arith.constant 0 : i32
    return %arg0, %c0_i32, %c0_i32_0 : i32, i32, i32
  }
  func.func @transform_1(%arg0: i32) -> (i32, i32) {
    %c0_i32 = arith.constant 0 : i32
    %c0_i32_0 = arith.constant 0 : i32
    %c0_i32_1 = arith.constant 0 : i32
    return %c0_i32, %c0_i32_0 : i32, i32
  }
  func.func @transform_2(%arg0: i32) -> (i32, i32) {
    %c0_i32 = arith.constant 0 : i32
    %c0_i32_0 = arith.constant 0 : i32
    %c0_i32_1 = arith.constant 0 : i32
    return %c0_i32, %c0_i32_0 : i32, i32
  }
  func.func @transform_3(%arg0: i32) -> (i32, i32) {
    %c0_i32 = arith.constant 0 : i32
    %c0_i32_0 = arith.constant 0 : i32
    %c0_i32_1 = arith.constant 0 : i32
    return %c0_i32, %c0_i32_0 : i32, i32
  }
  func.func @transform_4(%arg0: i32) -> (i32, i32) {
    %c0_i32 = arith.constant 0 : i32
    %c0_i32_0 = arith.constant 0 : i32
    %c0_i32_1 = arith.constant 0 : i32
    return %c0_i32, %c0_i32_0 : i32, i32
  }
  func.func @transform_5(%arg0: i32) -> (i32, i32) {
    %c0_i32 = arith.constant 0 : i32
    %c0_i32_0 = arith.constant 0 : i32
    %c0_i32_1 = arith.constant 0 : i32
    return %c0_i32, %c0_i32_0 : i32, i32
  }
  func.func @transform_6(%arg0: i32) -> (i32, i32) {
    %c0_i32 = arith.constant 0 : i32
    %c0_i32_0 = arith.constant 0 : i32
    %c0_i32_1 = arith.constant 0 : i32
    return %c0_i32, %c0_i32_0 : i32, i32
  }
  func.func @transform_7(%arg0: i32) -> (i32, i32) {
    %c0_i32 = arith.constant 0 : i32
    %c0_i32_0 = arith.constant 0 : i32
    %c0_i32_1 = arith.constant 0 : i32
    return %c0_i32, %c0_i32_0 : i32, i32
  }
  func.func @transform_8(%arg0: i32) -> (i32, i32, i32) {
    %c0_i32 = arith.constant 0 : i32
    %c0_i32_0 = arith.constant 0 : i32
    %c0_i32_1 = arith.constant 0 : i32
    return %arg0, %c0_i32, %c0_i32_0 : i32, i32, i32
  }
}

</mosaic_0001>

<bundles_post_ra>
// kernel: tpu_custom_call.1
= control target key start
LH: loop header
LB: loop body
LE: loop exit
PB: predicated region body
PF: predicated region fallthrough
CT: control target
= control target key end

     0   :  { %13 = vsyncpa [#allocation3], 0  ;;  %s1984_s0 = inlined_call_operand.vmem [shape: f32[2,4,256], index: 0, kind: input, shape index: {}]   ;;  %s1985_s1 = inlined_call_operand.vmem [shape: f32[4,1], index: 1, kind: input, shape index: {}]   ;;  %s1986_s2 = inlined_call_operand.hbm [shape: f32[4,8], index: 2, kind: input, shape index: {}]   ;;  %s1987_s3 = inlined_call_operand.vmem [shape: f32[1,8], index: 3, kind: input, shape index: {}]   ;;  %s1988_s4 = inlined_call_operand.vmem [shape: f32[1,8], index: 4, kind: input, shape index: {}]   ;;  %s1989_s5 = inlined_call_operand.vmem [shape: f32[1,8], index: 5, kind: input, shape index: {}]   ;;  %s1990_s6 = inlined_call_operand.vmem [shape: f32[8,4], index: 6, kind: input, shape index: {}]   ;;  %s1991_s7 = inlined_call_operand.vmem [shape: f32[1,4], index: 7, kind: input, shape index: {}]   ;;  %s1992_s8 = inlined_call_operand.hbm [shape: f32[2,2,256], index: 8, kind: output, shape index: {}]  }
   0x1   :  { %14 = vsyncpa [#allocation4], 0 }
   0x2   :  { %16 = vsyncpa [#allocation4 + $0x1], 0  ;;  %s1799_s27 = smov 0   ;;  %s1801_s28 = smov 0  }
   0x3   :  { %s1803_s29 = smov 0   ;;  %s1805_s30 = smov 0  }
   0x4 LB: > { %s1820_s9 = sadd.s32 4294967295, %s1744_s30   ;;  %s1479_s10 = sadd.s32 4294967294, %s1744_s30   ;;  %s1744_s30 = sphi %s1805_s30, %s2000_s30   ;;  %s1740_s29 = sphi %s1803_s29, %s1999_s29   ;;  %s1736_s28 = sphi %s1801_s28, %s1998_s28   ;;  %s1732_s27 = sphi %s1799_s27, %s1997_s27  }
   0x5   : > { %s1824_s11 = sadd.s32 1, %s1744_s30   ;;  %s202_s12 = sadd.s32 1, %s1740_s29 }
   0x6   : > { %s199_s13 = ssub.s32 %s1744_s30, %s1824_s11  ;;  %p212_p0 = scmp.ne.s32.totalorder %s1740_s29, %s1736_s28 }
   0x7   : > { %p200_p1 = scmp.eq.s32.totalorder %s199_s13, 0  ;;  %p213_p2 = scmp.eq.s32.totalorder %s1820_s9, 1 }
   0x8   : > { %p218_p3 = scmp.ne.s32.totalorder %s1736_s28, %s1732_s27  ;;  %p219_p4 = scmp.eq.s32.totalorder %s1479_s10, 1 }
   0x9   : > { %s1835_s14 = scalar_select %p200_p1, %s1740_s29, %s202_s12  }
   0xa   : > { %p1837_p5 = por %p213_p2, %p212_p0  ;;  %p1841_p6 = por %p219_p4, %p218_p3 }
   0xb   : > { %p1480_p7 = scmp.ge.s32.totalorder %s1744_s30, 1  ;;  %p226_p8 = scmp.lt.s32.totalorder %s1744_s30, 3 }
   0xc   : > { %s1994_s16 = scalar_select %p1841_p6, 1, 0 }
   0xd   : > { %p1595_p9 = scmp.eq.s32.totalorder %s1820_s9, 0  ;;  %p1848_p10 = pnand %p1480_p7, %p226_p8 }
   0xe   : > { %s1746_s18 = smov [#allocation2]  }
   0xf   : > { %s242_s19 = sshll.u32 %s1746_s18, 4  ;;  %p1587_p11 = pneg %p1848_p10  ;;  %s243_s19 = int_to_ptr.vmem [resolvable:$true] %s242_s19 }
  0x10   : > { %s1665_s20 = scalar_lea.vmem %s243_s19, 64  ;;  %p1673_p3 = scmp.lt.s32.totalorder %s243_s19, %s243_s19 }
  0x11   : > { %p1588_p12 = pnand %p1595_p9, %p1587_p11  ;;  %p1666_p0 = scmp.ne.s32.totalorder %s243_s19, %s1665_s20 }
  0x12   : > { %p1674_p4 = scmp.lt.s32.totalorder %s1665_s20, %s1665_s20 }
  0x13   : > { %p1656_p13 = pneg %p1588_p12 }
  0x14   : > { %p1675_p6 = por %p1674_p4, %p1673_p3 }
  0x15   : > { %p1668_p1 = pnand %p1666_p0, %p1656_p13 }
  0x17   : > { %p1669_p2 = pneg %p1668_p1 }
  0x19   : > { %p1676_p7 = pnand %p1675_p6, %p1669_p2 }
  0x1b   : > { %1679 = shalt.err (!%p1676_p7)
}
  0x1c   : > { %1590 = dma.hbm_to_vmem [thread:$0]  (!%p1588_p12), %s1986_s2, 64, %s243_s19, [#allocation3]  }
  0x1d   : > { %278 = sbr.rel (%p1848_p10) target bundleno = 2026 (0x7ea), region = 52 }
  0x22   : > { %1723 = dma.done.wait (%p1595_p9), [#allocation3], 64  }
  0x23   : > { %1725 = vsyncadd (%p1595_p9), [#allocation3], 4294967232  ;;  %v1747_v0 = vmov 0   ;;  %v318_v1 = vld [vmem:[%s1985_s1] sm:$0xf]  ;;  %p312_p6 = scmp.lt.s32.totalorder %s1820_s9, 1  ;;  %v326_v4 = vlaneseq }
  0x24   : > { %1637 = vset.pattern.permute.xlu0 %v1747_v0  ;;  %v1748_v2 = vmov 839922192   ;;  %vm335_vm0 = vcmask 1043456   ;;  %v378_v46 = vld [vmem:[#allocation2] sm:$0xf]  ;;  %v1749_v53 = vmov 0.0  }
  0x25   : > { %321 = vperm.xlu0 %1637, %v318_v1   ;;  %v324_v3 = vunpack.c.l.s4 %v1748_v2  ;;  %s313_s25 = scalar_select %p312_p6, %s1820_s9, 1  ;;  %v1871_v6 = vshrl.u32 %v326_v4, 7  ;;  %v391_v47 = vsel %vm335_vm0, %v378_v46, 0  ;;  %1526 = vmatprep.subr.mxu1 %v1749_v53  ;;  %vm1750_vm1 = vmmov 0  }
  0x26   : > { %v424_v48 = vand.u32 4294901760, %v391_v47  ;;  %1521 = vmatprep.subr.mxu0 %v1749_v53  ;;  %1528 = vmatprep.mubr.msk.f32.mxu1 %vm1750_vm1, %v1749_v53  ;;  %v382_v54 = vand.u32 127, %v326_v4  ;;  %vm387_vm2 = vcmask 31744   ;;  %v379_v4 = vld [vmem:[%s1987_s3] sm:$0x1]  ;;  %vm839_vm3 = vcmask 57344  }
  0x27   : > { %v325_v5 = vunpack.c.0.s8 %v324_v3  ;;  %s1495_s26 = sshll.u32 %s313_s25, 3  ;;  %1523 = vmatprep.mubr.msk.f32.mxu0 %vm1750_vm1, %v1749_v53  ;;  %vm861_vm4 = vcmask 64512   ;;  %s1751_s10 = smov 126  }
  0x28   : > { %s1876_s13 = scalar_lea.vmem %s1984_s0, %s1495_s26  ;;  %v501_v49 = vsub.f32 %v391_v47, %v424_v48  ;;  %1522 = vmatpush3.msra.mxu0 %v424_v48  ;;  %v385_v55 = vsub.s32 %v382_v54, %v1871_v6  ;;  %s1752_s12 = smov 2  }
  0x29   : > { %v1879_v7 = vsub.s32 %v325_v5, %v1871_v6  ;;  %v317_v9 = vld [vmem:[%s1876_s13] sm:$0xff]  ;;  %1531 = vmatprep.subr.mxu0 %v1749_v53  ;;  %s309_s17 = sand.u32 1, %s1736_s28   ;;  %s1496_s19 = sshll.u32 %s1820_s9, 6 }
  0x2a   : > { %v502_v50 = vand.u32 4294901760, %v501_v49  ;;  %s1485_s18 = sshll.u32 %s309_s17, 2  ;;  %s1406_s24 = scalar_lea.hbm %s1992_s8, %s1496_s19 }
  0x2b   : > { %s311_s20 = scalar_lea.vmem [#allocation5], %s1485_s18  ;;  %s1753_s26 = smov [#allocation5]  }
  0x2c   : > { %v503_v51 = vsub.f32 %v501_v49, %v502_v50  ;;  %s1408_s21 = sshll.u32 %s311_s20, 4  ;;  %s1409_s21 = int_to_ptr.vmem [resolvable:$true] %s1408_s21 }
  0x2d   : > { %s1680_s25 = scalar_lea.vmem %s1409_s21, 64 }
  0x2e   : > { %v504_v52 = vand.u32 4294901760, %v503_v51  ;;  %p1681_p8 = scmp.ne.s32.totalorder %s1409_s21, %s1680_s25 }
  0x30   : > { %1527 = vmatpush3.msra.mxu1 %v504_v52  ;;  %p1682_p9 = pnand %p1681_p8, %p1837_p5 }
  0x31   : > { %1536 = vmatprep.subr.mxu1 %v1749_v53 }
  0x32   : > { %p1683_p10 = pneg %p1682_p9 }
  0xa0   : > { %v322_v8 = vpop.permute.xlu0 %321 }
  0xa1   : > { %v329_v10 = vrot.slane %v322_v8, %v1879_v7 }
  0xa3   : > { %v331_v11 = vmul.f32 %v329_v10, %v317_v9 }
  0xa5   : > { %v333_v12 = vcombine.high %v331_v11, %v331_v11  ;;  %v336_v13 = vsel %vm335_vm0, %v331_v11, 0.0 }
  0xa6   : > { %v337_v14 = vrot.slane %v336_v13, 4 }
  0xa7   : > { %v343_v15 = vsel %vm335_vm0, %v333_v12, 0.0 }
  0xa8   : > { %v338_v16 = vadd.f32 %v337_v14, %v336_v13  ;;  %v344_v17 = vrot.slane %v343_v15, 4 }
  0xaa   : > { %v339_v18 = vrot.slane %v338_v16, 2  ;;  %v345_v19 = vadd.f32 %v344_v17, %v343_v15 }
  0xac   : > { %v340_v20 = vadd.f32 %v339_v18, %v338_v16  ;;  %v346_v21 = vrot.slane %v345_v19, 2 }
  0xae   : > { %v341_v22 = vrot.slane %v340_v20, 1  ;;  %v347_v23 = vadd.f32 %v346_v21, %v345_v19 }
  0xb0   : > { %v348_v24 = vrot.slane %v347_v23, 1  ;;  %v342_v25 = vadd.f32 %v341_v22, %v340_v20 }
  0xb2   : > { %v349_v26 = vadd.f32 %v348_v24, %v347_v23 }
  0xb4   : > { %v350_v27 = vmax.f32 %v342_v25, %v349_v26 }
  0xb6   : > { %351 = vmax.xlane.f32.xlu0 %v350_v27  ;;  %v859_v27 = vld [vmem:[%s1990_s6] sm:$0xff] }
 0x13f   : > { %v352_v28 = vpop.xlane.xlu0 %351 }
 0x140   : > { %v353_v29 = vsub.f32 %v342_v25, %v352_v28  ;;  %v354_v30 = vsub.f32 %v349_v26, %v352_v28  ;;  %v896_v28 = vand.u32 4294901760, %v859_v27 }
 0x142   : > { %v355_v31 = vmul.f32 1.442695, %v353_v29  ;;  %v357_v32 = vmul.f32 1.442695, %v354_v30  ;;  %v973_v29 = vsub.f32 %v859_v27, %v896_v28 }
 0x144   : > { %1638 = vpow2.f32 %v355_v31  ;;  %v974_v30 = vand.u32 4294901760, %v973_v29 }
 0x145   : > { %1640 = vpow2.f32 %v357_v32 }
 0x146   : > { %v975_v31 = vsub.f32 %v973_v29, %v974_v30 }
 0x148   : > { %v976_v32 = vand.u32 4294901760, %v975_v31 }
 0x151   : > { %v1639_v33 = vpop.eup %1638 }
 0x152   : > { %v1641_v34 = vpop.eup %1640 }
 0x153   : > { %v359_v35 = vadd.f32 %v1641_v34, %v1639_v33 }
 0x155   : > { %360 = vadd.xlane.f32.xlu1 %v359_v35 }
 0x1de   : > { %v361_v36 = vpop.xlane.xlu1 %360 }
 0x1df   : > { %1642 = vrcp.f32 %v361_v36 }
 0x1ec   : > { %v1643_v37 = vpop.eup %1642 }
 0x1ed   : > { %v363_v38 = vmul.f32 %v1643_v37, %v1639_v33  ;;  %v364_v39 = vmul.f32 %v1643_v37, %v1641_v34  ;;  %v854_v37 = vld [vmem:[%s1988_s4] sm:$0x1] }
 0x1ef   : > { %v1885_v40 = vcombine.low %v363_v38, %v364_v39  ;;  %v856_v39 = vld [vmem:[%s1989_s5] sm:$0x1] }
 0x1f1   : > { %v369_v41 = vmul.f32 %v1885_v40, %v317_v9 }
 0x1f3   : > { %v371_v42 = vcombine.high %v369_v41, %v369_v41  ;;  %v373_v43 = vsel %vm335_vm0, %v369_v41, 0.0 }
 0x1f5   : > { %v374_v44 = vsel %vm335_vm0, %v371_v42, 0.0 }
 0x1f6   : > { %v375_v45 = vadd.f32 %v374_v44, %v373_v43 }
 0x1f8   : > { %376 = vadd.xlane.f32.xlu1 %v375_v45 }
 0x281   : > { %v377_v56 = vpop.xlane.xlu1 %376 }
 0x282   : > { %v386_v57 = vrot.slane %v377_v56, %v385_v55  ;;  %v860_v55 = vld [vmem:[%s1991_s7] sm:$0x1] }
 0x284   : > { %v388_v58 = vsel %vm387_vm2, %v386_v57, 0 }
 0x285   : > { %v459_v59 = vand.u32 4294901760, %v388_v58 }
 0x287   : > { %v460_v60 = vsub.f32 %v388_v58, %v459_v59  ;;  %1529 = vmatmul.mubr.f32.vlgmr.msra.gmra.mxu1 %v459_v59 }
 0x288   : > { %1537 = vmatpush3.msra.mxu1 %v424_v48  ;;  %1538 = vmatprep.mubr.msk.f32.mxu1 %vm1750_vm1, %v1749_v53 }
 0x289   : > { %v461_v61 = vand.u32 4294901760, %v460_v60  ;;  %1546 = vmatprep.subr.mxu1 %v1749_v53 }
 0x28b   : > { %1539 = vmatmul.mubr.f32.vlgmr.msra.gmra.mxu1 %v461_v61  ;;  %v462_v62 = vsub.f32 %v460_v60, %v461_v61 }
 0x28c   : > { %1547 = vmatpush3.msra.mxu1 %v424_v48  ;;  %1548 = vmatprep.mubr.msk.f32.mxu1 %vm1750_vm1, %v1749_v53 }
 0x28d   : > { %v463_v63 = vand.u32 4294901760, %v462_v62  ;;  %1556 = vmatprep.subr.mxu1 %v1749_v53 }
 0x28f   : > { %1524 = vmatmul.mubr.f32.vlgmr.msra.gmra.mxu0 %v463_v63  ;;  %1549 = vmatmul.mubr.f32.vlgmr.msra.gmra.mxu1 %v459_v59 }
 0x290   : > { %1532 = vmatpush3.msra.mxu0 %v501_v49  ;;  %1533 = vmatprep.mubr.msk.f32.mxu0 %vm1750_vm1, %v1749_v53 }
 0x291   : > { %1541 = vmatprep.subr.mxu0 %v1749_v53  ;;  %1558 = vmatprep.mubr.msk.f32.mxu1 %vm1750_vm1, %v1749_v53 }
 0x292   : > { %1557 = vmatpush3.msra.mxu1 %v976_v32 }
 0x293   : > { %1534 = vmatmul.mubr.f32.vlgmr.msra.gmra.mxu0 %v460_v60  ;;  %1566 = vmatprep.subr.mxu1 %v1749_v53 }
 0x294   : > { %1542 = vmatpush3.msra.mxu0 %v502_v50  ;;  %1543 = vmatprep.mubr.msk.f32.mxu0 %vm1750_vm1, %v1749_v53 }
 0x295   : > { %1551 = vmatprep.subr.mxu0 %v1749_v53 }
 0x297   : > { %1544 = vmatmul.mubr.f32.vlgmr.msra.gmra.mxu0 %v459_v59 }
 0x298   : > { %1553 = vmatprep.mubr.msk.f32.mxu0 %vm1750_vm1, %v1749_v53  ;;  %1552 = vmatpush3.msra.mxu0 %v896_v28 }
 0x299   : > { %1561 = vmatprep.subr.mxu0 %v1749_v53 }
 0x347   : > { %v541_v0 = vpop.f32.mrf.mxu1 }
 0x349   : > { %v1530_v1 = vpop.f32.mrf.mxu1 }
 0x34b   : > { %v689_v2 = vpop.f32.mrf.mxu1 }
 0x34d   : > { %v1540_v3 = vpop.f32.mrf.mxu1 }
 0x34f   : > { %v465_v5 = vpop.f32.mrf.mxu0  ;;  %v835_v8 = vpop.f32.mrf.mxu1 }
 0x350   : > { %v466_v9 = vadd.f32 %v465_v5, %v379_v4 }
 0x351   : > { %v1525_v10 = vpop.f32.mrf.mxu0  ;;  %v1550_v11 = vpop.f32.mrf.mxu1 }
 0x352   : > { %v542_v12 = vadd.f32 %v541_v0, %v466_v9 }
 0x353   : > { %v615_v13 = vpop.f32.mrf.mxu0 }
 0x354   : > { %v616_v14 = vadd.f32 %v615_v13, %v542_v12 }
 0x355   : > { %v1535_v15 = vpop.f32.mrf.mxu0 }
 0x356   : > { %v690_v16 = vadd.f32 %v689_v2, %v616_v14 }
 0x357   : > { %v763_v17 = vpop.f32.mrf.mxu0 }
 0x358   : > { %v764_v18 = vadd.f32 %v763_v17, %v690_v16 }
 0x359   : > { %v1545_v19 = vpop.f32.mrf.mxu0 }
 0x35a   : > { %v836_v20 = vadd.f32 %v835_v8, %v764_v18 }
 0x35c   : > { %v840_v21 = vsel %vm839_vm3, %v836_v20, 0.0 }
 0x35d   : > { %841 = vadd.xlane.f32.xlu1 %v840_v21 }
 0x3e6   : > { %v842_v22 = vpop.xlane.xlu1 %841 }
 0x3e7   : > { %v844_v23 = vmul.f32 0.125, %v842_v22  ;;  %v1336_v22 = vsub.s32 0, %v1871_v6 }
 0x3e9   : > { %v845_v24 = vsub.f32 %v836_v20, %v844_v23 }
 0x3eb   : > { %v846_v25 = vmul.f32 %v845_v24, %v845_v24 }
 0x3ed   : > { %v847_v26 = vsel %vm839_vm3, %v846_v25, 0.0 }
 0x3ee   : > { %848 = vadd.xlane.f32.xlu1 %v847_v26 }
 0x477   : > { %v849_v33 = vpop.xlane.xlu1 %848 }
 0x478   : > { %v850_v34 = vmul.f32 0.125, %v849_v33 }
 0x47a   : > { %v851_v35 = vadd.f32 1e-05, %v850_v34 }
 0x47c   : > { %1644 = vrsqrt.f32 %v851_v35 }
 0x489   : > { %v1645_v36 = vpop.eup %1644 }
 0x48a   : > { %v853_v38 = vmul.f32 %v1645_v36, %v845_v24 }
 0x48c   : > { %v855_v41 = vmul.f32 %v854_v37, %v853_v38 }
 0x48e   : > { %v857_v42 = vadd.f32 %v856_v39, %v855_v41 }
 0x490   : > { %v858_v43 = vmax.f32 %v857_v42, 0.0 }
 0x492   : > { %v863_v44 = vsel %vm861_vm4, %v858_v43, 0 }
 0x493   : > { %v931_v45 = vand.u32 4294901760, %v863_v44 }
 0x495   : > { %v932_v46 = vsub.f32 %v863_v44, %v931_v45  ;;  %1559 = vmatmul.mubr.f32.vlgmr.msra.gmra.mxu1 %v931_v45 }
 0x496   : > { %1567 = vmatpush3.msra.mxu1 %v896_v28  ;;  %1568 = vmatprep.mubr.msk.f32.mxu1 %vm1750_vm1, %v1749_v53 }
 0x497   : > { %v933_v47 = vand.u32 4294901760, %v932_v46  ;;  %1576 = vmatprep.subr.mxu1 %v1749_v53 }
 0x499   : > { %1569 = vmatmul.mubr.f32.vlgmr.msra.gmra.mxu1 %v933_v47  ;;  %v934_v48 = vsub.f32 %v932_v46, %v933_v47 }
 0x49a   : > { %1577 = vmatpush3.msra.mxu1 %v896_v28  ;;  %1578 = vmatprep.mubr.msk.f32.mxu1 %vm1750_vm1, %v1749_v53  ;;  %v1351_v28 = vld [vmem:[%s1876_s13] sm:$0xcc] }
 0x49b   : > { %v935_v49 = vand.u32 4294901760, %v934_v48 }
 0x49d   : > { %1554 = vmatmul.mubr.f32.vlgmr.msra.gmra.mxu0 %v935_v49  ;;  %1579 = vmatmul.mubr.f32.vlgmr.msra.gmra.mxu1 %v931_v45 }
 0x49e   : > { %1562 = vmatpush3.msra.mxu0 %v973_v29  ;;  %1563 = vmatprep.mubr.msk.f32.mxu0 %vm1750_vm1, %v1749_v53 }
 0x49f   : > { %1571 = vmatprep.subr.mxu0 %v1749_v53 }
 0x4a1   : > { %1564 = vmatmul.mubr.f32.vlgmr.msra.gmra.mxu0 %v932_v46 }
 0x4a2   : > { %1572 = vmatpush3.msra.mxu0 %v974_v30  ;;  %1573 = vmatprep.mubr.msk.f32.mxu0 %vm1750_vm1, %v1749_v53  ;;  %v1331_v30 = vld [vmem:[%s1876_s13] sm:$0x33]  ;;  %s1394_s13 = scalar_lea.sflag [#allocation4], %s309_s17 }
 0x4a5   : > { %1574 = vmatmul.mubr.f32.vlgmr.msra.gmra.mxu0 %v931_v45 }
 0x555   : > { %v1013_v50 = vpop.f32.mrf.mxu1 }
 0x557   : > { %v1560_v51 = vpop.f32.mrf.mxu1 }
 0x559   : > { %v1161_v52 = vpop.f32.mrf.mxu1 }
 0x55b   : > { %v1570_v54 = vpop.f32.mrf.mxu1 }
 0x55d   : > { %v937_v56 = vpop.f32.mrf.mxu0  ;;  %v1307_v57 = vpop.f32.mrf.mxu1 }
 0x55e   : > { %v938_v58 = vadd.f32 %v937_v56, %v860_v55 }
 0x55f   : > { %v1555_v59 = vpop.f32.mrf.mxu0  ;;  %v1580_v60 = vpop.f32.mrf.mxu1 }
 0x560   : > { %v1014_v61 = vadd.f32 %v1013_v50, %v938_v58 }
 0x561   : > { %v1087_v62 = vpop.f32.mrf.mxu0 }
 0x562   : > { %v1088_v63 = vadd.f32 %v1087_v62, %v1014_v61 }
 0x563   : > { %v1565_v0 = vpop.f32.mrf.mxu0 }
 0x564   : > { %v1162_v1 = vadd.f32 %v1161_v52, %v1088_v63 }
 0x565   : > { %v1235_v53 = vpop.f32.mrf.mxu0 }
 0x566   : > { %v1236_v2 = vadd.f32 %v1235_v53, %v1162_v1 }
 0x567   : > { %v1575_v3 = vpop.f32.mrf.mxu0 }
 0x568   : > { %v1308_v4 = vadd.f32 %v1307_v57, %v1236_v2 }
 0x56a   : > { %1312 = vrot.lane.b32.xlu1 %v1308_v4, %s1751_s10 }
 0x5dc   : > { %v1313_v5 = vpop.permute.xlu1 %1312 }
 0x5dd   : > { %v1315_v8 = vmax.f32 %v1308_v4, %v1313_v5 }
 0x5df   : > { %1320 = vrot.lane.b32.xlu1 %v1315_v8, %s1752_s12  ;;  %v1316_v13 = vsub.f32 %v1308_v4, %v1315_v8 }
 0x5e1   : > { %v1317_v14 = vmul.f32 1.442695, %v1316_v13 }
 0x651   : > { %v1321_v9 = vpop.permute.xlu1 %1320 }
 0x652   : > { %v1323_v10 = vsub.f32 %v1308_v4, %v1321_v9 }
 0x654   : > { %v1324_v11 = vmul.f32 1.442695, %v1323_v10 }
 0x656   : > { %1646 = vpow2.f32 %v1324_v11 }
 0x657   : > { %1648 = vpow2.f32 %v1317_v14 }
 0x663   : > { %v1647_v12 = vpop.eup %1646 }
 0x664   : > { %1327 = vrot.lane.b32.xlu0 %v1647_v12, %s1751_s10  ;;  %v1649_v15 = vpop.eup %1648  ;;  %s1684_s10 = sshll.u32 %s1753_s26, 4  ;;  %s1685_s10 = int_to_ptr.vmem [resolvable:$false] %s1684_s10 }
 0x665   : > { %s1686_s9 = scalar_lea.vmem %s1685_s10, 128  ;;  %p1687_p11 = scmp.lt.s32.totalorder %s1409_s21, %s1685_s10 }
 0x666   : > { %p1688_p12 = scmp.lt.s32.totalorder %s1686_s9, %s1680_s25 }
 0x668   : > { %p1689_p13 = por %p1688_p12, %p1687_p11 }
 0x66a   : > { %p1690_p0 = pnand %p1689_p13, %p1683_p10 }
 0x6d6   : > { %v1328_v16 = vpop.permute.xlu0 %1327 }
 0x6d7   : > { %v1330_v17 = vadd.f32 %v1649_v15, %v1328_v16 }
 0x6d9   : > { %1650 = vrcp.f32 %v1330_v17  ;;  %1353 = vrot.lane.b32.xlu1 %v1330_v17, %s1752_s12 }
 0x6e6   : > { %v1651_v18 = vpop.eup %1650 }
 0x6e7   : > { %v1333_v19 = vmul.f32 %v1651_v18, %v1649_v15 }
 0x6e9   : > { %v1337_v25 = vrot.slane %v1333_v19, %v1336_v22 }
 0x74b   : > { %v1354_v20 = vpop.permute.xlu1 %1353 }
 0x74c   : > { %1652 = vrcp.f32 %v1354_v20 }
 0x759   : > { %v1653_v21 = vpop.eup %1652 }
 0x75a   : > { %v1357_v23 = vmul.f32 %v1653_v21, %v1647_v12 }
 0x75c   : > { %v1361_v24 = vrot.slane %v1357_v23, %v1336_v22 }
 0x75e   : > { %1364 = vbcast.lane.b32.xlu1 %v1361_v24, 258 }
 0x762   : > { %1339 = vbcast.lane.b32.xlu1 %v1337_v25, 256 }
 0x7d0   : > { %v1365_v26 = vpop.permute.xlu1 %1364 }
 0x7d1   : > { %v1373_v27 = vrot.slane %v1365_v26, %v1879_v7 }
 0x7d3   : > { %v1374_v29 = vrot.slane %v1373_v27, 6 }
 0x7d4   : > { %v1340_v31 = vpop.permute.xlu1 %1339 }
 0x7d5   : > { %v1376_v32 = vmul.f32 %v1374_v29, %v1351_v28  ;;  %v1348_v33 = vrot.slane %v1340_v31, %v1879_v7 }
 0x7d7   : > { %v1488_v6 = vrot.slane %v1376_v32, 10  ;;  %v1350_v34 = vmul.f32 %v1348_v33, %v1331_v30 }
 0x7d9   : > { %v1381_v35 = vadd.f32 %v1488_v6, %v1350_v34 }
 0x7db   : > { %v1382_v36 = vmul.f32 %v1381_v35, %v1885_v40 }
 0x7dd   : > { %1489 = vst.sshfl [vmem:[%s311_s20] sm:$0x33 pattern:$0x76325410] %v1382_v36 }
 0x7de   : > { %1693 = shalt.err (!%p1690_p0)
}
 0x7df   : > { %s1694_s12 = scalar_lea.hbm %s1406_s24, 64  ;;  %s1698_s19 = scalar_lea.hbm %s1992_s8, 128 }
 0x7e0   : > { %p1695_p1 = scmp.ne.s32.totalorder %s1406_s24, %s1694_s12  ;;  %p1699_p4 = scmp.lt.s32.totalorder %s1406_s24, %s1992_s8 }
 0x7e1   : > { %p1700_p7 = scmp.lt.s32.totalorder %s1698_s19, %s1694_s12 }
 0x7e2   : > { %p1696_p2 = pnand %p1695_p1, %p1837_p5 }
 0x7e3   : > { %p1701_p6 = por %p1700_p7, %p1699_p4 }
 0x7e4   : > { %p1697_p3 = pneg %p1696_p2 }
 0x7e6   : > { %p1702_p8 = pnand %p1701_p6, %p1697_p3 }
 0x7e8   : > { %1705 = shalt.err (!%p1702_p8)
}
 0x7e9   : > { %1585 = dma.vmem_to_hbm [thread:$0]  (%p1837_p5), %s1409_s21, 64, %s1406_s24, %s1394_s13  }
 0x7ea PF: > { %p1597_p9 = scmp.ge.s32.totalorder %s1744_s30, 2  ;;  %s1420_s23 = sand.u32 1, %s1732_s27  }
 0x7eb   : > { %p1996_p10 = scmp.ne.s32.totalorder %s1994_s16, 0  ;;  %s1421_s25 = scalar_lea.sflag [#allocation4], %s1420_s23 }
 0x7ed   : > { %p1592_p11 = pnand %p1597_p9, %p1996_p10 }
 0x7ef   : > { %p1593_p12 = pneg %p1592_p11 }
 0x7f1   : > { %1727 = dma.done.wait (%p1593_p12), %s1421_s25, 64  }
 0x7f2   : > { %1729 = vsyncadd (%p1593_p12), %s1421_s25, 4294967232  ;;  %p19_p13 = scmp.ge.s32.totalorder %s1824_s11, 4   ;;  %s1997_s27 = smov %s1736_s28 }
 0x7f3   : > { %s1998_s28 = smov %s1740_s29  ;;  %s1999_s29 = smov %s1835_s14 }
 0x7f4   : > { %s2000_s30 = smov %s1824_s11  ;;  %21 = sbr.rel (!%p19_p13) target bundleno = 4 (0x4), region = 92 }
 0x7f9   :  { %1426 = vsyncpa [#allocation3], 1 }
 0x7fa   :  { %1428 = vsyncpa [#allocation3 + $0x1], 1 }
 0x7fb   :  { %1429 = vsyncpa [#allocation4], 1 }
 0x7fc   :  { %1431 = vsyncpa [#allocation4 + $0x1], 1 }

</bundles_post_ra>
